<compile_context>
chip_gen: v5e
topology: v5e:2x2
jax: 0.10.0
libtpu: 0.0.40
codegen_flags: <defaults>
</compile_context>

<pallas_src>
import functools

import jax
import jax.numpy as jnp
from jax.experimental import pallas as pl
from jax.experimental.pallas import tpu as pltpu


def _round_up(x, m):
    return ((x + m - 1) // m) * m


def _vmem_limit_bytes():
    cap = 64 * 1024 * 1024  # conservative fallback == v7x physical VMEM per TC
    try:
        cap = int(pltpu.get_tpu_info().vmem_capacity_bytes)
    except Exception:
        pass
    # Leave ~25% headroom for compiler-internal scratch (spilled intermediates,
    # double buffers the planner does not account for).
    return max(32 * 1024 * 1024, (cap * 3) // 4)


def _pick_tm(M, E, itemsize, vmem_limit):
    """Row-tile size. Big tiles amortize per-grid-step overhead and (when
    streaming) weight re-streaming; require >= 2 row tiles when possible so
    both v7x TensorCores get work on the 'parallel' axis."""
    align = 8 if itemsize >= 4 else 16
    if M <= 128:
        return _round_up(M, align)
    budget = vmem_limit // 3  # f32 acc + double-buffered x and out tiles
    for cand in (1024, 512, 256, 128):
        if M >= 2 * cand and cand * E * 4 + 4 * cand * E * itemsize <= budget:
            return cand
    return 128


def _pick_tf(F, tm, E, itemsize, weights_resident, vmem_limit):
    """dim_ff chunk. Must be a multiple of 128 (or the full dim)."""
    if F % 128 != 0:
        return F
    h_budget = 4 * 1024 * 1024          # (tm, tf) f32 intermediate
    stream_budget = vmem_limit // 3     # double-buffered streamed weight tiles
    for cand in (2048, 1024, 512, 256, 128):
        if F % cand != 0:
            continue
        if tm * cand * 4 > h_budget:
            continue
        if (not weights_resident) and 4 * E * cand * itemsize > stream_budget:
            continue
        return cand
    return 128


# ----------------------------------------------------------------------------
# Kernel A: weights resident in VMEM (grid-invariant blocks, DMA'd once).
# 1-D grid over row tiles; dim_ff reduced by a statically unrolled chunk loop.
# ----------------------------------------------------------------------------
def ffn_kernel_resident(x_ref, w1_ref, b1_ref, w2_ref, b2_ref, o_ref, *, tf):
    # x_ref:  (tm, E)
    # w1_ref: (E, F), b1_ref: (1, F)
    # w2_ref: (F, E), b2_ref: (1, E)
    # o_ref:  (tm, E)
    F_ = w1_ref.shape[1]
    nk = F_ // tf
    x = x_ref[...]
    acc = jnp.zeros((x.shape[0], o_ref.shape[1]), jnp.float32)
    for k in range(nk):  # static unroll; slices are 128-aligned (or full dim)
        lo, hi = k * tf, (k + 1) * tf
        h = jnp.dot(x, w1_ref[:, lo:hi], preferred_element_type=jnp.float32)
        h = jnp.maximum(h + b1_ref[:, lo:hi].astype(jnp.float32), 0.0)
        # TODO(synk): training-mode dropout (pltpu.prng_*) not implemented;
        # eval-mode dropout == identity.
        acc = acc + jnp.dot(
            h.astype(w2_ref.dtype), w2_ref[lo:hi, :],
            preferred_element_type=jnp.float32,
        )
    o_ref[...] = (acc + b2_ref[...].astype(jnp.float32)).astype(o_ref.dtype)


# ----------------------------------------------------------------------------
# Kernel B: weight-streaming fallback (weights too big for VMEM).
# 2-D grid (row tiles, dim_ff tiles); f32 VMEM accumulator across the k axis.
# ----------------------------------------------------------------------------
def ffn_kernel_stream(x_ref, w1_ref, b1_ref, w2_ref, b2_ref, o_ref, acc_ref):
    # x_ref:  (tm, E)
    # w1_ref: (E, tf), b1_ref: (1, tf)   -- dim_ff tile k
    # w2_ref: (tf, E), b2_ref: (1, E)
    # o_ref:  (tm, E), acc_ref: (tm, E) f32 scratch
    k = pl.program_id(1)
    nk = pl.num_programs(1)

    @pl.when(k == 0)
    def _init():
        acc_ref[...] = jnp.zeros_like(acc_ref)

    h = jnp.dot(x_ref[...], w1_ref[...], preferred_element_type=jnp.float32)
    h = jnp.maximum(h + b1_ref[...].astype(jnp.float32), 0.0)
    # TODO(synk): training-mode dropout not implemented; eval mode == identity.
    acc_ref[...] += jnp.dot(
        h.astype(w2_ref.dtype), w2_ref[...], preferred_element_type=jnp.float32
    )

    @pl.when(k == nk - 1)
    def _finalize():
        o_ref[...] = (acc_ref[...] + b2_ref[...].astype(jnp.float32)).astype(
            o_ref.dtype
        )


def feed_forward(x, w1, b1, w2, b2, *, tm=None, tf=None, weights_resident=None,
                 compute_dtype=None):
    """y = relu(x @ w1 + b1) @ w2 + b2   (dropout == identity, eval mode).

    x: [B, S, E]; w1: [E, F]; b1: [F]; w2: [F, E]; b2: [E].
    compute_dtype: optionally cast x/w1/w2 (e.g. jnp.bfloat16) for the fast
    MXU path; accumulation stays f32 and the output keeps x's original dtype.
    """
    B, S, E = x.shape
    F_ = w1.shape[1]
    M = B * S
    out_dtype = x.dtype

    if compute_dtype is not None:
        x = x.astype(compute_dtype)
        w1 = w1.astype(compute_dtype)
        w2 = w2.astype(compute_dtype)

    itemsize = jnp.dtype(x.dtype).itemsize
    vmem_limit = _vmem_limit_bytes()

    auto_resident = weights_resident is None
    weight_bytes = 2 * E * F_ * itemsize  # w1 + w2
    if auto_resident:
        # Assume the pipeline may double-buffer even grid-invariant blocks.
        weights_resident = 2 * weight_bytes <= (vmem_limit * 3) // 5

    if tm is None:
        tm = _pick_tm(M, E, itemsize, vmem_limit)
    if tf is None:
        tf = _pick_tf(F_, tm, E, itemsize, weights_resident, vmem_limit)
        if auto_resident and weights_resident and F_ // tf > 16:
            # Too many statically-unrolled chunks; fall back to streaming.
            weights_resident = False
            tf = _pick_tf(F_, tm, E, itemsize, False, vmem_limit)
    assert F_ % tf == 0, (F_, tf)

    M_pad = _round_up(M, tm)
    x2 = x.reshape(M, E)
    if M_pad != M:
        x2 = jnp.pad(x2, ((0, M_pad - M), (0, 0)))
    b1_2 = b1.reshape(1, F_)
    b2_2 = b2.reshape(1, E)

    n_row_tiles = M_pad // tm
    weight_reads = 1 if weights_resident else n_row_tiles
    cost = pl.CostEstimate(
        flops=4 * M_pad * E * F_,  # two matmuls, 2*M*E*F each
        transcendentals=0,
        bytes_accessed=(2 * M_pad * E + weight_reads * (2 * E * F_ + F_) + E)
        * itemsize,
    )

    if weights_resident:
        kernel = functools.partial(ffn_kernel_resident, tf=tf)
        grid = (n_row_tiles,)
        in_specs = [
            pl.BlockSpec((tm, E), lambda i: (i, 0)),    # x row tile
            pl.BlockSpec((E, F_), lambda i: (0, 0)),    # w1 (VMEM-resident)
            pl.BlockSpec((1, F_), lambda i: (0, 0)),    # b1 (VMEM-resident)
            pl.BlockSpec((F_, E), lambda i: (0, 0)),    # w2 (VMEM-resident)
            pl.BlockSpec((1, E), lambda i: (0, 0)),     # b2 (VMEM-resident)
        ]
        out_specs = pl.BlockSpec((tm, E), lambda i: (i, 0))
        scratch_shapes = []
        dims = ("parallel",)
    else:
        kernel = ffn_kernel_stream
        grid = (n_row_tiles, F_ // tf)
        in_specs = [
            pl.BlockSpec((tm, E), lambda i, k: (i, 0)),  # x row tile
            pl.BlockSpec((E, tf), lambda i, k: (0, k)),  # w1 column tile
            pl.BlockSpec((1, tf), lambda i, k: (0, k)),  # b1 tile
            pl.BlockSpec((tf, E), lambda i, k: (k, 0)),  # w2 row tile
            pl.BlockSpec((1, E), lambda i, k: (0, 0)),   # b2 (grid-invariant)
        ]
        out_specs = pl.BlockSpec((tm, E), lambda i, k: (i, 0))
        scratch_shapes = [pltpu.VMEM((tm, E), jnp.float32)]
        dims = ("parallel", "arbitrary")

    out = pl.pallas_call(
        kernel,
        out_shape=jax.ShapeDtypeStruct((M_pad, E), out_dtype),
        grid_spec=pltpu.PrefetchScalarGridSpec(
            num_scalar_prefetch=0,
            grid=grid,
            in_specs=in_specs,
            out_specs=out_specs,
            scratch_shapes=scratch_shapes,
        ),
        compiler_params=pltpu.CompilerParams(
            dimension_semantics=dims,
            vmem_limit_bytes=vmem_limit,
        ),
        cost_estimate=cost,
    )(x2, w1, b1_2, w2, b2_2)

    return out[:M].reshape(B, S, E)


def _ref(x, w1, b1, w2, b2):
    return jnp.maximum(x @ w1 + b1, 0.0) @ w2 + b2


def _ref_mixed(x, w1, b1, w2, b2, cdt):
    xb, w1b, w2b = x.astype(cdt), w1.astype(cdt), w2.astype(cdt)
    h = jnp.dot(xb, w1b, preferred_element_type=jnp.float32) + b1
    h = jnp.maximum(h, 0.0)
    return jnp.dot(h.astype(cdt), w2b, preferred_element_type=jnp.float32) + b2


if __name__ == "__main__":
    key = jax.random.PRNGKey(0)

    # --- Test 1: small shapes (resident weights, single dim_ff chunk) --------
    B, S, E, F_ = 2, 8, 32, 64
    k0, kx, kw1, kb1, kw2, kb2 = jax.random.split(key, 6)
    x = jax.random.normal(kx, (B, S, E), dtype=jnp.float32)
    w1 = jax.random.normal(kw1, (E, F_), dtype=jnp.float32) * 0.1
    b1 = jax.random.normal(kb1, (F_,), dtype=jnp.float32) * 0.1
    w2 = jax.random.normal(kw2, (F_, E), dtype=jnp.float32) * 0.1
    b2 = jax.random.normal(kb2, (E,), dtype=jnp.float32) * 0.1

    y = jax.block_until_ready(feed_forward(x, w1, b1, w2, b2))
    assert y.shape == (B, S, E)
    assert jnp.allclose(y, _ref(x, w1, b1, w2, b2), atol=1e-5, rtol=1e-5)

    # --- Test 2: resident weights, multiple row tiles + multiple F chunks ----
    B2, S2, E2, F2 = 4, 128, 128, 1024
    k1, kx2, kw1b, kb1b, kw2b, kb2b = jax.random.split(k0, 6)
    x_b = jax.random.normal(kx2, (B2, S2, E2), dtype=jnp.float32)
    w1_b = jax.random.normal(kw1b, (E2, F2), dtype=jnp.float32) * 0.05
    b1_b = jax.random.normal(kb1b, (F2,), dtype=jnp.float32) * 0.05
    w2_b = jax.random.normal(kw2b, (F2, E2), dtype=jnp.float32) * 0.05
    b2_b = jax.random.normal(kb2b, (E2,), dtype=jnp.float32) * 0.05
    ref_b = _ref(x_b, w1_b, b1_b, w2_b, b2_b)

    y_b = jax.block_until_ready(
        feed_forward(x_b, w1_b, b1_b, w2_b, b2_b, tf=256))
    assert y_b.shape == (B2, S2, E2)
    assert jnp.allclose(y_b, ref_b, atol=1e-3, rtol=1e-3)

    # --- Test 3: forced weight-streaming path (2-D grid, f32 accumulator) ----
    y_s = jax.block_until_ready(
        feed_forward(x_b, w1_b, b1_b, w2_b, b2_b, tf=256,
                     weights_resident=False))
    assert jnp.allclose(y_s, ref_b, atol=1e-3, rtol=1e-3)

    # --- Test 4: bf16 compute path (f32 accumulation, f32 output) ------------
    y_h = jax.block_until_ready(
        feed_forward(x_b, w1_b, b1_b, w2_b, b2_b,
                     compute_dtype=jnp.bfloat16))
    ref_h = _ref_mixed(x_b, w1_b, b1_b, w2_b, b2_b, jnp.bfloat16)
    assert y_h.shape == (B2, S2, E2)
    assert jnp.allclose(y_h, ref_h, atol=5e-3, rtol=5e-3)

    print("KERNEL_OK")
</pallas_src>

<mosaic_0001>
module attributes {stable_mosaic.version = 11 : i64} {
  func.func @ffn_kernel_resident(%arg0: i32, %arg1: memref<16x32xf32, #tpu.memory_space<vmem>>, %arg2: memref<32x64xf32, #tpu.memory_space<vmem>>, %arg3: memref<1x64xf32, #tpu.memory_space<vmem>>, %arg4: memref<64x32xf32, #tpu.memory_space<vmem>>, %arg5: memref<1x32xf32, #tpu.memory_space<vmem>>, %arg6: memref<16x32xf32, #tpu.memory_space<vmem>>) attributes {dimension_semantics = [#tpu.dimension_semantics<parallel>], iteration_bounds = array<i64: 1>, scalar_prefetch = 0 : i64, scratch_operands = 0 : i64, tpu.core_type = #tpu.core_type<tc>, window_params = [{transform_indices = @transform_0, window_bounds = array<i64: 16, 32>}, {pipeline_mode = #tpu.pipeline_mode<synchronous>, transform_indices = @transform_1, window_bounds = array<i64: 32, 64>}, {pipeline_mode = #tpu.pipeline_mode<synchronous>, transform_indices = @transform_2, window_bounds = array<i64: 1, 64>}, {pipeline_mode = #tpu.pipeline_mode<synchronous>, transform_indices = @transform_3, window_bounds = array<i64: 64, 32>}, {pipeline_mode = #tpu.pipeline_mode<synchronous>, transform_indices = @transform_4, window_bounds = array<i64: 1, 32>}, {transform_indices = @transform_5, window_bounds = array<i64: 16, 32>}]} {
    %c0 = arith.constant 0 : index
    %c0_0 = arith.constant 0 : index
    %0 = vector.load %arg1[%c0, %c0_0] : memref<16x32xf32, #tpu.memory_space<vmem>>, vector<16x32xf32>
    %cst = arith.constant 0.000000e+00 : f32
    %1 = vector.broadcast %cst : f32 to vector<16x32xf32>
    %c0_1 = arith.constant 0 : index
    %c0_2 = arith.constant 0 : index
    %2 = vector.load %arg2[%c0_1, %c0_2] : memref<32x64xf32, #tpu.memory_space<vmem>>, vector<32x64xf32>
    %cst_3 = arith.constant dense<0.000000e+00> : vector<16x64xf32>
    %3 = tpu.matmul %0, %2, %cst_3 {dimension_numbers = #tpu.dot_dimension_numbers<[1], [0], [0], [1], [0, 0, 1, 1], [], []>} : vector<16x32xf32>, vector<32x64xf32>, vector<16x64xf32> -> vector<16x64xf32>
    %c0_4 = arith.constant 0 : index
    %c0_5 = arith.constant 0 : index
    %4 = vector.load %arg3[%c0_4, %c0_5] : memref<1x64xf32, #tpu.memory_space<vmem>>, vector<1x64xf32>
    %5 = vector.broadcast %4 : vector<1x64xf32> to vector<16x64xf32>
    %6 = arith.addf %3, %5 : vector<16x64xf32>
    %cst_6 = arith.constant 0.000000e+00 : f32
    %7 = vector.broadcast %cst_6 : f32 to vector<16x64xf32>
    %8 = arith.maximumf %6, %7 : vector<16x64xf32>
    %c0_7 = arith.constant 0 : index
    %c0_8 = arith.constant 0 : index
    %9 = vector.load %arg4[%c0_7, %c0_8] : memref<64x32xf32, #tpu.memory_space<vmem>>, vector<64x32xf32>
    %cst_9 = arith.constant dense<0.000000e+00> : vector<16x32xf32>
    %10 = tpu.matmul %8, %9, %cst_9 {dimension_numbers = #tpu.dot_dimension_numbers<[1], [0], [0], [1], [0, 0, 1, 1], [], []>} : vector<16x64xf32>, vector<64x32xf32>, vector<16x32xf32> -> vector<16x32xf32>
    %11 = arith.addf %1, %10 : vector<16x32xf32>
    %c0_10 = arith.constant 0 : index
    %c0_11 = arith.constant 0 : index
    %12 = vector.load %arg5[%c0_10, %c0_11] : memref<1x32xf32, #tpu.memory_space<vmem>>, vector<1x32xf32>
    %13 = vector.broadcast %12 : vector<1x32xf32> to vector<16x32xf32>
    %14 = arith.addf %11, %13 : vector<16x32xf32>
    %c0_12 = arith.constant 0 : index
    %c0_13 = arith.constant 0 : index
    %15 = vector.load %arg6[%c0_12, %c0_13] : memref<16x32xf32, #tpu.memory_space<vmem>>, vector<16x32xf32>
    tpu.vector_store %arg6[%c0_12, %c0_13], %14 {strides = array<i32>} : memref<16x32xf32, #tpu.memory_space<vmem>>, vector<16x32xf32>,
    return
  }
  func.func @transform_0(%arg0: i32) -> (i32, i32) {
    %c0_i32 = arith.constant 0 : i32
    %c0_i32_0 = arith.constant 0 : i32
    return %arg0, %c0_i32 : i32, i32
  }
  func.func @transform_1(%arg0: i32) -> (i32, i32) {
    %c0_i32 = arith.constant 0 : i32
    %c0_i32_0 = arith.constant 0 : i32
    %c0_i32_1 = arith.constant 0 : i32
    return %c0_i32, %c0_i32_0 : i32, i32
  }
  func.func @transform_2(%arg0: i32) -> (i32, i32) {
    %c0_i32 = arith.constant 0 : i32
    %c0_i32_0 = arith.constant 0 : i32
    %c0_i32_1 = arith.constant 0 : i32
    return %c0_i32, %c0_i32_0 : i32, i32
  }
  func.func @transform_3(%arg0: i32) -> (i32, i32) {
    %c0_i32 = arith.constant 0 : i32
    %c0_i32_0 = arith.constant 0 : i32
    %c0_i32_1 = arith.constant 0 : i32
    return %c0_i32, %c0_i32_0 : i32, i32
  }
  func.func @transform_4(%arg0: i32) -> (i32, i32) {
    %c0_i32 = arith.constant 0 : i32
    %c0_i32_0 = arith.constant 0 : i32
    %c0_i32_1 = arith.constant 0 : i32
    return %c0_i32, %c0_i32_0 : i32, i32
  }
  func.func @transform_5(%arg0: i32) -> (i32, i32) {
    %c0_i32 = arith.constant 0 : i32
    %c0_i32_0 = arith.constant 0 : i32
    return %arg0, %c0_i32 : i32, i32
  }
}

</mosaic_0001>

<bundles_post_ra>
// kernel: tpu_custom_call.1
= control target key start
LH: loop header
LB: loop body
LE: loop exit
PB: predicated region body
PF: predicated region fallthrough
CT: control target
= control target key end

     0   :  { %s260_s0 = inlined_call_operand.vmem [shape: f32[16,32], index: 0, kind: input, shape index: {}]   ;;  %s261_s1 = inlined_call_operand.vmem [shape: f32[32,64], index: 1, kind: input, shape index: {}]   ;;  %s262_s2 = inlined_call_operand.vmem [shape: f32[1,64], index: 2, kind: input, shape index: {}]   ;;  %s263_s3 = inlined_call_operand.vmem [shape: f32[64,32], index: 3, kind: input, shape index: {}]   ;;  %s264_s4 = inlined_call_operand.vmem [shape: f32[1,32], index: 4, kind: input, shape index: {}]   ;;  %s265_s5 = inlined_call_operand.hbm [shape: f32[16,32], index: 5, kind: output, shape index: {}]  }
   0x1   :  { %v26_v0 = vld [vmem:[%s261_s1 + $0x18] sm:$0xff]  ;;  %v25_v1 = vld [vmem:[%s261_s1 + $0x10] sm:$0xff]  ;;  %v24_v2 = vld [vmem:[%s261_s1 + $0x8] sm:$0xff] }
   0x2   :  { %129 = vmatpush.msra.mxu3 %v26_v0  ;;  %50 = vmatpush.msra.mxu0 %v26_v0  ;;  %v70_v3 = vld [vmem:[%s263_s3 + $0x38] sm:$0xff]  ;;  %v69_v4 = vld [vmem:[%s263_s3 + $0x30] sm:$0xff]  ;;  %v23_v5 = vld [vmem:[%s261_s1] sm:$0xff] }
   0x3   :  { %133 = vmatpush.msra.mxu2 %v70_v3  ;;  %90 = vmatpush.msra.mxu1 %v70_v3 }
   0x4   :  { %130 = vmatpush.msra.mxu3 %v25_v1  ;;  %51 = vmatpush.msra.mxu0 %v25_v1 }
   0x5   :  { %10 = vsyncpa [#allocation3], 0  ;;  %v22_v6 = vld [vmem:[%s260_s0 + $0x8] sm:$0xff]  ;;  %vm31_vm0 = vcmask 261120   ;;  %v21_v7 = vld [vmem:[%s260_s0] sm:$0xff]  ;;  %134 = vmatpush.msra.mxu2 %v69_v4  ;;  %91 = vmatpush.msra.mxu1 %v69_v4  ;;  %vm75_vm1 = vcmask 523264  }
   0x6   :  { %131 = vmatpush.msra.mxu3 %v24_v2  ;;  %52 = vmatpush.msra.mxu0 %v24_v2  ;;  %v68_v8 = vld [vmem:[%s263_s3 + $0x28] sm:$0xff]  ;;  %v67_v9 = vld [vmem:[%s263_s3 + $0x20] sm:$0xff]  ;;  %v66_v10 = vld [vmem:[%s263_s3 + $0x18] sm:$0xff]  ;;  %s113_s25 = sshll.u32 %s265_s5, 4  ;;  %s173_s26 = smov 128   ;;  %s114_s25 = int_to_ptr.hbm [resolvable:$true] %s113_s25 }
   0x7   :  { %135 = vmatpush.msra.mxu2 %v68_v8  ;;  %92 = vmatpush.msra.mxu1 %v68_v8  ;;  %v65_v11 = vld [vmem:[%s263_s3 + $0x10] sm:$0xff]  ;;  %v64_v12 = vld [vmem:[%s263_s3 + $0x8] sm:$0xff]  ;;  %v63_v13 = vld [vmem:[%s263_s3] sm:$0xff]  ;;  %s172_s3 = smov [#allocation2]   ;;  %s174_s27 = smov 8  }
   0x8   :  { %132 = vmatpush.msra.mxu3 %v23_v5  ;;  %53 = vmatpush.msra.mxu0 %v23_v5  ;;  %v144_v14 = vld [vmem:[%s262_s2] ss:$0 sm:$0xff]  ;;  %s111_s23 = sshll.u32 %s172_s3, 4  ;;  %s112_s23 = int_to_ptr.vmem [resolvable:$true] %s111_s23 }
   0x9   :  { %126 = vmatmul.msk.f32.vlgmr.msra.gmra.mxu3 %vm31_vm0, %v22_v6  ;;  %125 = vmatmul.msk.f32.vlgmr.msra.gmra.mxu0 %vm31_vm0, %v21_v7  ;;  %v145_v21 = vld [vmem:[%s264_s4] ss:$0 sm:$0xff] }
   0xa   :  { %136 = vmatpush.msra.mxu2 %v67_v9  ;;  %93 = vmatpush.msra.mxu1 %v67_v9 }
   0xc   :  { %137 = vmatpush.msra.mxu2 %v66_v10  ;;  %94 = vmatpush.msra.mxu1 %v66_v10 }
   0xe   :  { %138 = vmatpush.msra.mxu2 %v65_v11  ;;  %95 = vmatpush.msra.mxu1 %v65_v11 }
  0x10   :  { %139 = vmatpush.msra.mxu2 %v64_v12  ;;  %96 = vmatpush.msra.mxu1 %v64_v12 }
  0x12   :  { %140 = vmatpush.msra.mxu2 %v63_v13  ;;  %97 = vmatpush.msra.mxu1 %v63_v13 }
  0x86   :  { %v55_v15 = vpop.f32.mrf.mxu0 }
  0x87   :  { %v56_v16 = vadd.f32 %v144_v14, %v55_v15 }
  0x89   :  { %v61_v17 = vmax.f32 %v56_v16, 0.0 }
  0x8b   :  { %127 = vmatmul.msk.f32.vlgmr.msra.gmra.mxu1 %vm75_vm1, %v61_v17 }
  0x8c   :  { %v58_v18 = vpop.f32.mrf.mxu3 }
  0x8d   :  { %v59_v19 = vadd.f32 %v144_v14, %v58_v18 }
  0x8f   :  { %v62_v20 = vmax.f32 %v59_v19, 0.0 }
  0x91   :  { %128 = vmatmul.msk.f32.vlgmr.msra.gmra.mxu2 %vm75_vm1, %v62_v20 }
 0x108   :  { %v99_v22 = vpop.f32.mrf.mxu1 }
 0x109   :  { %v100_v23 = vadd.f32 %v145_v21, %v99_v22 }
 0x10b   :  { %105 = vst.msk [vmem:[#allocation2] sm:$0xff] %vm31_vm0, %v100_v23 }
 0x114   :  { %v102_v24 = vpop.f32.mrf.mxu2 }
 0x115   :  { %v103_v25 = vadd.f32 %v145_v21, %v102_v24 }
 0x117   :  { %106 = vst.msk [vmem:[#allocation2 + $0x8] sm:$0xff] %vm31_vm0, %v103_v25 }
 0x118   :  { %119 = dma.vmem_to_hbm [thread:$0]  %s112_s23, 256, %s114_s25, [#allocation3], %s173_s26, %s173_s26, %s174_s27  }
 0x119   :  { %170 = dma.done.wait [#allocation3], 256  }
 0x11a   :  { %171 = vsyncadd [#allocation3], 4294967040 }
 0x11b   :  { %124 = vsyncpa [#allocation3], 1 }

</bundles_post_ra>
